<compile_context>
chip_gen: v7x
topology: tpu7x:2x2x1
jax: 0.10.0
libtpu: 0.0.40
codegen_flags: <defaults>
</compile_context>

<pallas_src>
import jax
import jax.numpy as jnp
from jax.experimental import pallas as pl
from jax.experimental.pallas import tpu as pltpu

NUM_CLASSES = 10
IN_DIM = 24 * 32   # 768
HID_DIM = 64
LANE = 128


def _round_up(x, m):
    return ((x + m - 1) // m) * m


# --------------------------------------------------------------------------- #
# One-time parameter fusion (hoisted out of the per-call path).
# --------------------------------------------------------------------------- #
def fuse_classifier_params(w1_t, b1, w2_t, b2, *, pad_to_lanes=False,
                           weight_dtype=jnp.bfloat16):
    """Fuse the two bias-only-separated Linears (exact in real arithmetic):

        (relu(z) @ W1t + b1) @ W2t + b2 == relu(z) @ (W1t @ W2t) + (b1 @ W2t + b2)

    Returns (w_fused, b_fused).  w_fused is cast to `weight_dtype` (bf16 by
    default, halves the dominant weight DMA); b_fused stays f32 (tiny, keeps
    the bias add exact).  With pad_to_lanes=True the class dim is zero-padded
    to a multiple of 128 for unmasked lane-dense output stores (large-B path).
    """
    w1_t = w1_t.astype(jnp.float32)
    w2_t = w2_t.astype(jnp.float32)
    w_fused = jnp.dot(w1_t, w2_t, preferred_element_type=jnp.float32)          # (768, C)
    b_fused = jnp.dot(b1.astype(jnp.float32), w2_t,
                      preferred_element_type=jnp.float32) + b2                 # (1, C)
    if pad_to_lanes:
        C = w_fused.shape[1]
        c_pad = _round_up(C, LANE)
        w_fused = jnp.pad(w_fused, ((0, 0), (0, c_pad - C)))
        b_fused = jnp.pad(b_fused, ((0, 0), (0, c_pad - C)))
    return w_fused.astype(weight_dtype), b_fused.astype(jnp.float32)


# --------------------------------------------------------------------------- #
# Kernel: ReLU (f32) -> cast bf16 -> one MXU matmul (f32 accumulation) + bias.
# --------------------------------------------------------------------------- #
def _classifier_kernel(z_ref, w_ref, b_ref, out_ref):
    z = jnp.maximum(z_ref[...], 0.0).astype(w_ref.dtype)               # (TB, 768)
    o = jnp.dot(z, w_ref[...], preferred_element_type=jnp.float32)     # (TB, C_out)
    out_ref[...] = (o + b_ref[...]).astype(out_ref.dtype)


def classifier_forward(z, w_fused, b_fused, num_classes, *, block_b=1024):
    """z: (B, 768) f32.  w_fused: (768, C_out) bf16.  b_fused: (1, C_out) f32."""
    B, D = z.shape
    c_out = w_fused.shape[1]

    # Batch tile: at least 2 grid steps when B allows (feeds both v7x TCs),
    # capped at block_b.  pl.cdiv grid -> ragged last block handled by Pallas
    # (no wrapper-side pad/copy of z; waste bounded to < 1 tile).
    tb = min(block_b, max(8, _round_up(pl.cdiv(B, 2), 8)))
    grid = (pl.cdiv(B, tb),)

    cost = pl.CostEstimate(
        flops=2 * B * D * c_out,
        transcendentals=0,
        bytes_accessed=(z.dtype.itemsize * B * D
                        + w_fused.dtype.itemsize * D * c_out
                        + b_fused.dtype.itemsize * c_out
                        + 4 * B * c_out),
    )

    out = pl.pallas_call(
        _classifier_kernel,
        out_shape=jax.ShapeDtypeStruct((B, c_out), jnp.float32),
        grid=grid,
        in_specs=[
            pl.BlockSpec((tb, D), lambda i: (i, 0)),        # batch tile of z
            pl.BlockSpec((D, c_out), lambda i: (0, 0)),     # fused weight (VMEM-resident)
            pl.BlockSpec((1, c_out), lambda i: (0, 0)),     # fused bias   (VMEM-resident)
        ],
        out_specs=pl.BlockSpec((tb, c_out), lambda i: (i, 0)),
        compiler_params=pltpu.CompilerParams(
            dimension_semantics=("parallel",),              # v7x: shard batch over both TCs
        ),
        cost_estimate=cost,
    )(z, w_fused, b_fused)

    return out[:, :num_classes] if c_out != num_classes else out


# --------------------------------------------------------------------------- #
# Parameters + unfused reference (matches the PyTorch module op-for-op).
# --------------------------------------------------------------------------- #
def init_params(key):
    """Deterministic synthetic parameters matching nn.Linear shapes.

    PyTorch stores Linear weights as (out, in); we build them that way and
    transpose to (in, out) for the kernel-facing layout.
    """
    k1, k2, k3, k4 = jax.random.split(key, 4)
    lim1 = 1.0 / (IN_DIM ** 0.5)
    w1 = jax.random.uniform(k1, (HID_DIM, IN_DIM), jnp.float32, -lim1, lim1)
    b1 = jax.random.uniform(k2, (HID_DIM,), jnp.float32, -lim1, lim1)
    lim2 = 1.0 / (HID_DIM ** 0.5)
    w2 = jax.random.uniform(k3, (NUM_CLASSES, HID_DIM), jnp.float32, -lim2, lim2)
    b2 = jax.random.uniform(k4, (NUM_CLASSES,), jnp.float32, -lim2, lim2)
    return w1.T, b1.reshape(1, -1), w2.T, b2.reshape(1, -1)


def reference_forward(z, w1_t, b1, w2_t, b2):
    h = jnp.maximum(z, 0.0) @ w1_t + b1
    return h @ w2_t + b2


if __name__ == "__main__":
    key = jax.random.PRNGKey(0)
    kz, kp = jax.random.split(key)

    B = 8  # small batch
    z = jax.random.normal(kz, (B, IN_DIM), dtype=jnp.float32)
    w1_t, b1, w2_t, b2 = init_params(kp)

    # One-time fusion + bf16 weight cast; unpadded class dim (latency path).
    w_fused, b_fused = fuse_classifier_params(w1_t, b1, w2_t, b2, pad_to_lanes=False)

    fwd = jax.jit(lambda zz: classifier_forward(zz, w_fused, b_fused, NUM_CLASSES))
    out = jax.block_until_ready(fwd(z))

    ref = reference_forward(z, w1_t, b1, w2_t, b2)
    assert out.shape == (B, NUM_CLASSES)
    # bf16 matmul operands (f32 accumulation) + exact-in-real-arithmetic fusion:
    # compare against the f32 unfused reference with a loosened tolerance.
    assert jnp.allclose(out, ref, atol=2e-2, rtol=2e-2), float(jnp.max(jnp.abs(out - ref)))

    print("KERNEL_OK")
</pallas_src>

<mosaic_0001>
module attributes {stable_mosaic.version = 11 : i64} {
  func.func @_classifier_kernel(%arg0: i32, %arg1: memref<8x768xf32, #tpu.memory_space<vmem>>, %arg2: memref<768x10xbf16, #tpu.memory_space<vmem>>, %arg3: memref<1x10xf32, #tpu.memory_space<vmem>>, %arg4: memref<8x10xf32, #tpu.memory_space<vmem>>) attributes {dimension_semantics = [#tpu.dimension_semantics<parallel>], iteration_bounds = array<i64: 1>, scalar_prefetch = 0 : i64, scratch_operands = 0 : i64, tpu.core_type = #tpu.core_type<tc>, window_params = [{transform_indices = @transform_0, window_bounds = array<i64: 8, 768>}, {pipeline_mode = #tpu.pipeline_mode<synchronous>, transform_indices = @transform_1, window_bounds = array<i64: 768, 10>}, {pipeline_mode = #tpu.pipeline_mode<synchronous>, transform_indices = @transform_2, window_bounds = array<i64: 1, 10>}, {transform_indices = @transform_3, window_bounds = array<i64: 8, 10>}]} {
    %c0 = arith.constant 0 : index
    %c0_0 = arith.constant 0 : index
    %0 = vector.load %arg1[%c0, %c0_0] : memref<8x768xf32, #tpu.memory_space<vmem>>, vector<8x768xf32>
    %cst = arith.constant 0.000000e+00 : f32
    %1 = vector.broadcast %cst : f32 to vector<8x768xf32>
    %2 = arith.maximumf %0, %1 : vector<8x768xf32>
    %3 = arith.truncf %2 : vector<8x768xf32> to vector<8x768xbf16>
    %c0_1 = arith.constant 0 : index
    %c0_2 = arith.constant 0 : index
    %4 = vector.load %arg2[%c0_1, %c0_2] : memref<768x10xbf16, #tpu.memory_space<vmem>>, vector<768x10xbf16>
    %cst_3 = arith.constant dense<0.000000e+00> : vector<8x10xf32>
    %5 = tpu.matmul %3, %4, %cst_3 {dimension_numbers = #tpu.dot_dimension_numbers<[1], [0], [0], [1], [0, 0, 1, 1], [], []>} : vector<8x768xbf16>, vector<768x10xbf16>, vector<8x10xf32> -> vector<8x10xf32>
    %c0_4 = arith.constant 0 : index
    %c0_5 = arith.constant 0 : index
    %6 = vector.load %arg3[%c0_4, %c0_5] : memref<1x10xf32, #tpu.memory_space<vmem>>, vector<1x10xf32>
    %7 = vector.broadcast %6 : vector<1x10xf32> to vector<8x10xf32>
    %8 = arith.addf %5, %7 : vector<8x10xf32>
    %c0_6 = arith.constant 0 : index
    %c0_7 = arith.constant 0 : index
    %9 = vector.load %arg4[%c0_6, %c0_7] : memref<8x10xf32, #tpu.memory_space<vmem>>, vector<8x10xf32>
    tpu.vector_store %arg4[%c0_6, %c0_7], %8 {strides = array<i32>} : memref<8x10xf32, #tpu.memory_space<vmem>>, vector<8x10xf32>,
    return
  }
  func.func @transform_0(%arg0: i32) -> (i32, i32) {
    %c0_i32 = arith.constant 0 : i32
    %c0_i32_0 = arith.constant 0 : i32
    return %arg0, %c0_i32 : i32, i32
  }
  func.func @transform_1(%arg0: i32) -> (i32, i32) {
    %c0_i32 = arith.constant 0 : i32
    %c0_i32_0 = arith.constant 0 : i32
    %c0_i32_1 = arith.constant 0 : i32
    return %c0_i32, %c0_i32_0 : i32, i32
  }
  func.func @transform_2(%arg0: i32) -> (i32, i32) {
    %c0_i32 = arith.constant 0 : i32
    %c0_i32_0 = arith.constant 0 : i32
    %c0_i32_1 = arith.constant 0 : i32
    return %c0_i32, %c0_i32_0 : i32, i32
  }
  func.func @transform_3(%arg0: i32) -> (i32, i32) {
    %c0_i32 = arith.constant 0 : i32
    %c0_i32_0 = arith.constant 0 : i32
    return %arg0, %c0_i32 : i32, i32
  }
}

</mosaic_0001>

<bundles_post_ra>
// kernel: _lambda_.1
= control target key start
LH: loop header
LB: loop body
LE: loop exit
PB: predicated region body
PF: predicated region fallthrough
CT: control target
= control target key end

     0   :  { %8 = vsyncpa [#allocation3], 0  ;;  %s900_s0 = inlined_call_operand.hbm [shape: f32[8,768], index: 0, kind: input, shape index: {}]   ;;  %s901_s1 = inlined_call_operand.hbm [shape: bf16[768,10], index: 1, kind: input, shape index: {}]   ;;  %s902_s2 = inlined_call_operand.vmem [shape: f32[1,10], index: 2, kind: input, shape index: {}]   ;;  %s903_s3 = inlined_call_operand.hbm [shape: f32[8,10], index: 3, kind: output, shape index: {}]  }
   0x1   :  { %9 = vsyncpa [#allocation6], 0 }
   0x2   :  { %10 = vsyncpa [#allocation4], 0  ;;  %s829_s12 = smov [#allocation2]   ;;  %s830_s14 = smov [#allocation5]  }
   0x3   :  { %s17_s13 = sshll.u32 %s829_s12, 4  ;;  %s26_s15 = sshll.u32 %s830_s14, 4  ;;  %s18_s13 = int_to_ptr.vmem [resolvable:$true] %s17_s13  ;;  %s854_s15 = int_to_ptr.vmem [resolvable:$true] %s26_s15 }
   0x4   :  { %s757_s18 = scalar_lea.hbm %s900_s0, 768 }
   0x5   :  { %p758_p0 = scmp.ne.s32.totalorder %s900_s0, %s757_s18  ;;  %p761_p1 = scmp.lt.u32.totalorder %s757_s18, %s900_s0 }
   0x7   :  { %p763_p2 = pnand %p761_p1, %p758_p0 }
   0x9   :  { %766 = shalt.err (!%p763_p2)
}
   0xa   :  { %s767_s23 = scalar_lea.vmem %s18_s13, 768  ;;  %p772_p4 = scmp.lt.s32.totalorder %s18_s13, %s18_s13 }
   0xb   :  { %p768_p3 = scmp.ne.s32.totalorder %s18_s13, %s767_s23  ;;  %p773_p5 = scmp.lt.s32.totalorder %s767_s23, %s767_s23 }
   0xd   :  { %p774_p6 = por %p773_p5, %p772_p4 }
   0xf   :  { %p775_p7 = pnand %p774_p6, %p768_p3 }
  0x11   :  { %778 = shalt.err (!%p775_p7)
}
  0x12   :  { %20 = dma.hbm_to_vmem [thread:$0]  %s900_s0, 768, %s18_s13, [#allocation3]  }
  0x13   :  { %s779_s28 = scalar_lea.hbm %s901_s1, 6144 }
  0x14   :  { %p780_p8 = scmp.ne.s32.totalorder %s901_s1, %s779_s28  ;;  %p783_p9 = scmp.lt.u32.totalorder %s779_s28, %s901_s1 }
  0x16   :  { %p785_p10 = pnand %p783_p9, %p780_p8 }
  0x18   :  { %788 = shalt.err (!%p785_p10)
}
  0x19   :  { %s789_s6 = scalar_lea.vmem %s854_s15, 6144  ;;  %p794_p12 = scmp.lt.s32.totalorder %s854_s15, %s854_s15 }
  0x1a   :  { %p790_p11 = scmp.ne.s32.totalorder %s854_s15, %s789_s6  ;;  %p795_p13 = scmp.lt.s32.totalorder %s789_s6, %s789_s6 }
  0x1c   :  { %p796_p0 = por %p795_p13, %p794_p12 }
  0x1e   :  { %p797_p1 = pnand %p796_p0, %p790_p11 }
  0x20   :  { %800 = shalt.err (!%p797_p1)
}
  0x21   :  { %s831_s0 = smov 64   ;;  %s832_s7 = smov 4  }
  0x22   :  { %32 = dma.hbm_to_vmem [thread:$0]  %s901_s1, 6144, %s854_s15, [#allocation6], %s831_s0, %s831_s0, %s832_s7  }
  0x23   :  { %823 = dma.done.wait [#allocation3], 768  }
  0x24   :  { %824 = vsyncadd [#allocation3], 4294966528 }
  0x25   :  { %825 = dma.done.wait [#allocation6], 6144  }
  0x26   :  { %826 = vsyncadd [#allocation6], 4294961152  ;;  %v709_v0 = vld [vmem:[#allocation5 + $0x40] sm:$0xff]   ;;  %v713_v4 = vld [vmem:[#allocation5 + $0x48] sm:$0xff]   ;;  %s833_s11 = smov [#allocation7]   ;;  %vm571_vm0 = vcmask 80896  }
  0x27   :  { %v710_v1 = vld [vmem:[#allocation5] sm:$0xff]   ;;  %638 = vmatprep.subr.bf16.mxu0 %v709_v0  ;;  %v714_v5 = vld [vmem:[#allocation5 + $0x8] sm:$0xff]   ;;  %v717_v8 = vld [vmem:[#allocation5 + $0x50] sm:$0xff]   ;;  %s579_s12 = sshll.u32 %s833_s11, 4  ;;  %s580_s12 = int_to_ptr.vmem [resolvable:$true] %s579_s12 }
  0x28   :  { %v711_v2 = vld [vmem:[#allocation5 + $0xc0] sm:$0xff]   ;;  %639 = vmatpush3.bf16.msra.mxu0 %v710_v1  ;;  %v715_v6 = vld [vmem:[#allocation5 + $0xc8] sm:$0xff]   ;;  %v718_v9 = vld [vmem:[#allocation5 + $0x10] sm:$0xff]   ;;  %p806_p3 = scmp.lt.s32.totalorder %s580_s12, %s580_s12 }
  0x29   :  { %v712_v3 = vld [vmem:[#allocation5 + $0x80] sm:$0xff]   ;;  %660 = vmatprep.subr.bf16.mxu1 %v711_v2  ;;  %640 = vmatprep.subr.bf16.mxu0 %v713_v4  ;;  %v716_v7 = vld [vmem:[#allocation5 + $0x88] sm:$0xff]   ;;  %v719_v10 = vld [vmem:[#allocation5 + $0xd0] sm:$0xff]  }
  0x2a   :  { %661 = vmatpush3.bf16.msra.mxu1 %v712_v3  ;;  %v720_v11 = vld [vmem:[#allocation5 + $0x90] sm:$0xff]   ;;  %v721_v12 = vld [vmem:[#allocation5 + $0x58] sm:$0xff]   ;;  %v725_v16 = vld [vmem:[#allocation5 + $0x60] sm:$0xff]  }
  0x2b   :  { %662 = vmatprep.subr.bf16.mxu1 %v715_v6  ;;  %v722_v13 = vld [vmem:[#allocation5 + $0x18] sm:$0xff]   ;;  %v726_v17 = vld [vmem:[#allocation5 + $0x20] sm:$0xff]   ;;  %v729_v20 = vld [vmem:[#allocation5 + $0x68] sm:$0xff]  }
  0x2c   :  { %641 = vmatpush3.bf16.msra.mxu0 %v714_v5  ;;  %v723_v14 = vld [vmem:[#allocation5 + $0xd8] sm:$0xff]   ;;  %v727_v18 = vld [vmem:[#allocation5 + $0xe0] sm:$0xff]   ;;  %v730_v21 = vld [vmem:[#allocation5 + $0x28] sm:$0xff]  }
  0x2d   :  { %642 = vmatprep.subr.bf16.mxu0 %v717_v8  ;;  %v724_v15 = vld [vmem:[#allocation5 + $0x98] sm:$0xff]   ;;  %v728_v19 = vld [vmem:[#allocation5 + $0xa0] sm:$0xff]   ;;  %v731_v22 = vld [vmem:[#allocation5 + $0xe8] sm:$0xff]  }
  0x2e   :  { %663 = vmatpush3.bf16.msra.mxu1 %v716_v7  ;;  %v732_v23 = vld [vmem:[#allocation5 + $0xa8] sm:$0xff]   ;;  %v733_v24 = vld [vmem:[#allocation5 + $0x70] sm:$0xff]   ;;  %v737_v28 = vld [vmem:[#allocation5 + $0x78] sm:$0xff]  }
  0x2f   :  { %664 = vmatprep.subr.bf16.mxu1 %v719_v10  ;;  %v734_v25 = vld [vmem:[#allocation5 + $0x30] sm:$0xff]   ;;  %v738_v29 = vld [vmem:[#allocation5 + $0x38] sm:$0xff]   ;;  %v741_v36 = vld [vmem:[#allocation5 + $0x140] sm:$0xff]  }
  0x30   :  { %643 = vmatpush3.bf16.msra.mxu0 %v718_v9  ;;  %v735_v26 = vld [vmem:[#allocation5 + $0xf0] sm:$0xff]   ;;  %v739_v30 = vld [vmem:[#allocation5 + $0xf8] sm:$0xff]   ;;  %v45_v37 = vld [vmem:[#allocation2 + $0x18] sm:$0xff] }
  0x31   :  { %644 = vmatprep.subr.bf16.mxu0 %v721_v12  ;;  %v736_v27 = vld [vmem:[#allocation5 + $0xb0] sm:$0xff]   ;;  %v43_v31 = vld [vmem:[#allocation2 + $0x8] sm:$0xff]  ;;  %v51_v39 = vmax.f32 %v45_v37, 0.0  ;;  %v742_v40 = vld [vmem:[#allocation5 + $0x100] sm:$0xff]  }
  0x32   :  { %665 = vmatpush3.bf16.msra.mxu1 %v720_v11  ;;  %v49_v32 = vmax.f32 %v43_v31, 0.0  ;;  %v740_v33 = vld [vmem:[#allocation5 + $0xb8] sm:$0xff]   ;;  %v42_v34 = vld [vmem:[#allocation2] sm:$0xff]  ;;  %v44_v42 = vld [vmem:[#allocation2 + $0x10] sm:$0xff] }
  0x33   :  { %666 = vmatprep.subr.bf16.mxu1 %v723_v14  ;;  %v48_v35 = vmax.f32 %v42_v34, 0.0  ;;  %v57_v43 = vpack.c.bf16 %v51_v39, %v51_v39  ;;  %v50_v44 = vmax.f32 %v44_v42, 0.0  ;;  %v743_v45 = vld [vmem:[#allocation5 + $0x148] sm:$0xff]   ;;  %v745_v48 = vld [vmem:[#allocation5 + $0x150] sm:$0xff]   ;;  %v747_v50 = vld [vmem:[#allocation5 + $0x158] sm:$0xff]  }
  0x34   :  { %645 = vmatpush3.bf16.msra.mxu0 %v722_v13  ;;  %v55_v38 = vpack.c.bf16 %v49_v32, %v49_v32  ;;  %v744_v47 = vld [vmem:[#allocation5 + $0x108] sm:$0xff]   ;;  %v746_v49 = vld [vmem:[#allocation5 + $0x110] sm:$0xff]   ;;  %v748_v51 = vld [vmem:[#allocation5 + $0x118] sm:$0xff]  }
  0x35   :  { %646 = vmatprep.subr.bf16.mxu0 %v725_v16  ;;  %v54_v41 = vpack.c.bf16 %v48_v35, %v48_v35  ;;  %523 = vmatprep.mubr.bf16.mxu1 %v57_v43  ;;  %v56_v46 = vpack.c.bf16 %v50_v44, %v50_v44  ;;  %v749_v52 = vld [vmem:[#allocation5 + $0x160] sm:$0xff]   ;;  %v47_v53 = vld [vmem:[#allocation2 + $0x28] sm:$0xff]  ;;  %v751_v56 = vld [vmem:[#allocation5 + $0x168] sm:$0xff]  }
  0x36   :  { %667 = vmatpush3.bf16.msra.mxu1 %v724_v15  ;;  %483 = vmatprep.mubr.bf16.mxu0 %v55_v38  ;;  %v750_v54 = vld [vmem:[#allocation5 + $0x120] sm:$0xff]   ;;  %v53_v55 = vmax.f32 %v47_v53, 0.0  ;;  %v752_v58 = vld [vmem:[#allocation5 + $0x128] sm:$0xff]   ;;  %v753_v59 = vld [vmem:[#allocation5 + $0x170] sm:$0xff]  }
  0x37   :  { %668 = vmatprep.subr.bf16.mxu1 %v727_v18  ;;  %v754_v60 = vld [vmem:[#allocation5 + $0x130] sm:$0xff]   ;;  %v755_v62 = vld [vmem:[#allocation5 + $0x178] sm:$0xff]  }
  0x38   :  { %647 = vmatpush3.bf16.msra.mxu0 %v726_v17  ;;  %v59_v57 = vpack.c.bf16 %v53_v55, %v53_v55  ;;  %v46_v61 = vld [vmem:[#allocation2 + $0x20] sm:$0xff]  ;;  %v756_v0 = vld [vmem:[#allocation5 + $0x138] sm:$0xff]  }
  0x39   :  { %648 = vmatprep.subr.bf16.mxu0 %v729_v20  ;;  %v52_v63 = vmax.f32 %v46_v61, 0.0  ;;  %v589_v3 = vld [vmem:[%s902_s2] ss:$0 sm:$0xff]  ;;  %s801_s2 = scalar_lea.vmem %s580_s12, 128 }
  0x3a   :  { %669 = vmatpush3.bf16.msra.mxu1 %v728_v19  ;;  %p802_p2 = scmp.ne.s32.totalorder %s580_s12, %s801_s2  ;;  %p807_p4 = scmp.lt.s32.totalorder %s801_s2, %s801_s2 }
  0x3b   :  { %670 = vmatprep.subr.bf16.mxu1 %v731_v22  ;;  %v58_v1 = vpack.c.bf16 %v52_v63, %v52_v63 }
  0x3c   :  { %649 = vmatpush3.bf16.msra.mxu0 %v730_v21  ;;  %p808_p5 = por %p807_p4, %p806_p3 }
  0x3d   :  { %650 = vmatprep.subr.bf16.mxu0 %v733_v24 }
  0x3e   :  { %671 = vmatpush3.bf16.msra.mxu1 %v732_v23  ;;  %p809_p6 = pnand %p808_p5, %p802_p2 }
  0x3f   :  { %672 = vmatprep.subr.bf16.mxu1 %v735_v26 }
  0x40   :  { %651 = vmatpush3.bf16.msra.mxu0 %v734_v25 }
  0x41   :  { %652 = vmatprep.subr.bf16.mxu0 %v737_v28 }
  0x42   :  { %673 = vmatpush3.bf16.msra.mxu1 %v736_v27 }
  0x43   :  { %674 = vmatprep.subr.bf16.mxu1 %v739_v30 }
  0x44   :  { %653 = vmatpush3.bf16.msra.mxu0 %v738_v29 }
  0x45   :  { %682 = vmatprep.subr.bf16.mxu0 %v741_v36 }
  0x46   :  { %675 = vmatpush3.bf16.msra.mxu1 %v740_v33 }
  0x47   :  { %484 = vmatmul.mubr.bf16.vlgmr.msra.gmra.mrb[0].mxu0 %v54_v41 }
  0x48   :  { %683 = vmatpush3.bf16.msra.mxu0 %v742_v40  ;;  %563 = vmatprep.mubr.bf16.mxu0 %v59_v57 }
  0x49   :  { %684 = vmatprep.subr.bf16.mxu0 %v743_v45  ;;  %524 = vmatmul.mubr.bf16.vlgmr.msra.gmra.mrb[0].mxu1 %v56_v46 }
  0x4c   :  { %685 = vmatpush3.bf16.msra.mxu0 %v744_v47 }
  0x4d   :  { %686 = vmatprep.subr.bf16.mxu0 %v745_v48 }
  0x50   :  { %687 = vmatpush3.bf16.msra.mxu0 %v746_v49 }
  0x51   :  { %688 = vmatprep.subr.bf16.mxu0 %v747_v50 }
  0x54   :  { %689 = vmatpush3.bf16.msra.mxu0 %v748_v51 }
  0x55   :  { %690 = vmatprep.subr.bf16.mxu0 %v749_v52 }
  0x58   :  { %691 = vmatpush3.bf16.msra.mxu0 %v750_v54 }
  0x59   :  { %692 = vmatprep.subr.bf16.mxu0 %v751_v56 }
  0x5c   :  { %693 = vmatpush3.bf16.msra.mxu0 %v752_v58 }
  0x5d   :  { %694 = vmatprep.subr.bf16.mxu0 %v753_v59 }
  0x60   :  { %695 = vmatpush3.bf16.msra.mxu0 %v754_v60 }
  0x61   :  { %696 = vmatprep.subr.bf16.mxu0 %v755_v62 }
  0x64   :  { %697 = vmatpush3.bf16.msra.mxu0 %v756_v0 }
  0x67   :  { %564 = vmatmul.mubr.bf16.vlgmr.msra.gmra.mrb[4].mxu0 %v58_v1 }
 0x11a   :  { %v654_v2 = vpop.f32.mrb[0].mxu0 }
 0x11b   :  { %v655_v4 = vpop.f32.mrb[1].mxu0 }
 0x11c   :  { %v656_v5 = vadd.f32 %v655_v4, %v654_v2  ;;  %v657_v6 = vpop.f32.mrb[2].mxu0  ;;  %v676_v7 = vpop.f32.mrb[0].mxu1 }
 0x11d   :  { %v658_v8 = vpop.f32.mrb[3].mxu0  ;;  %v677_v10 = vpop.f32.mrb[1].mxu1 }
 0x11e   :  { %v486_v9 = vadd.f32 %v656_v5, %v589_v3  ;;  %v678_v11 = vadd.f32 %v677_v10, %v676_v7  ;;  %v679_v12 = vpop.f32.mrb[2].mxu1 }
 0x11f   :  { %v680_v13 = vpop.f32.mrb[3].mxu1 }
 0x120   :  { %v526_v14 = vadd.f32 %v678_v11, %v486_v9 }
 0x13a   :  { %v698_v15 = vpop.f32.mrb[4].mxu0 }
 0x13b   :  { %v699_v16 = vpop.f32.mrb[5].mxu0 }
 0x13c   :  { %v700_v17 = vadd.f32 %v699_v16, %v698_v15  ;;  %v701_v18 = vpop.f32.mrb[6].mxu0 }
 0x13d   :  { %v702_v19 = vpop.f32.mrb[7].mxu0 }
 0x13e   :  { %v566_v20 = vadd.f32 %v700_v17, %v526_v14 }
 0x140   :  { %572 = vst.msk [vmem:[#allocation7] sm:$0xff] %vm571_vm0, %v566_v20 }
 0x141   :  { %812 = shalt.err (!%p809_p6)
}
 0x142   :  { %s813_s15 = scalar_lea.hbm %s903_s3, 128 }
 0x143   :  { %p814_p7 = scmp.ne.s32.totalorder %s903_s3, %s813_s15  ;;  %p817_p8 = scmp.lt.u32.totalorder %s813_s15, %s903_s3 }
 0x145   :  { %p819_p9 = pnand %p817_p8, %p814_p7 }
 0x147   :  { %822 = shalt.err (!%p819_p9)
}
 0x148   :  { %582 = dma.vmem_to_hbm [thread:$0]  %s580_s12, 128, %s903_s3, [#allocation4]  }
 0x149   :  { %827 = dma.done.wait [#allocation4], 128  }
 0x14a   :  { %828 = vsyncadd [#allocation4], 4294967168 }
 0x14b   :  { %586 = vsyncpa [#allocation3], 1 }
 0x14c   :  { %587 = vsyncpa [#allocation6], 1 }
 0x14d   :  { %588 = vsyncpa [#allocation4], 1 }

</bundles_post_ra>
